<compile_context>
chip_gen: v7x
topology: tpu7x:2x2x1
jax: 0.10.0
libtpu: 0.0.40
codegen_flags: <defaults>
</compile_context>

<pallas_src>
import math

import jax
import jax.numpy as jnp
from jax.experimental import pallas as pl
from jax.experimental.pallas import tpu as pltpu

_LOG_2PI = math.log(2.0 * math.pi)
_PAD_BIG = 1e30  # finite "never wins the min" pad; +inf would NaN in the MXU


def _round_up(x, m):
    return ((x + m - 1) // m) * m


def _min_dist_kernel(uzT_aug_ref, lz_aug_ref, min_out_ref):
    """Running min over labeled tiles of  ||l_j||^2 - 2<u_i, l_j>  per query lane."""
    k = pl.program_id(1)

    # Output block index is constant along k -> tile stays resident in VMEM
    # across the reduction axis and doubles as the accumulator.
    @pl.when(k == 0)
    def _init():
        min_out_ref[...] = jnp.full(min_out_ref.shape, jnp.inf, min_out_ref.dtype)

    # Augmented contraction: last "feature" holds ||l||^2 on the L side and
    # 1.0 on the U side, so this single MXU op produces ||l||^2 - 2<u,l>.
    partial = jax.lax.dot_general(
        lz_aug_ref[...], uzT_aug_ref[...],
        dimension_numbers=(((1,), (0,)), ((), ())),
        preferred_element_type=jnp.float32)                     # (tM, tm)

    min_out_ref[...] = jnp.minimum(
        min_out_ref[...], jnp.min(partial, axis=0, keepdims=True))  # (1, tm)


def _min_l2_distance(U_z, L_z, uz_sq, *, mxu_dtype=None, tile_m=None):
    """min_j ||U_z[i] - L_z[j]||_2 for every query row, via a tiled Pallas kernel.

    U_z: (N, D) float32 queries, L_z: (M, D) float32 labeled rows (M > 0),
    uz_sq: (N,) float32 precomputed ||U_z||^2 per row.
    """
    N, D = U_z.shape
    M = L_z.shape[0]

    if mxu_dtype is None:
        mxu_dtype = jnp.float32  # bf16 is faster but loses precision (cancellation)
    itemsize = jnp.dtype(mxu_dtype).itemsize

    # ---- tile sizes ---------------------------------------------------------
    # Queries on the lane axis.  Larger tm cuts the dominant L_z re-stream
    # ((Npad/tm)*Mpad*Daug*bytes), but keep >= 2 query tiles when N > 128 so
    # the "parallel" axis can feed both v7x TensorCores.
    if N <= 128:
        tm = 128
    else:
        npad128 = _round_up(N, 128)
        tm = int(min(512, max(128, (npad128 // 2) // 128 * 128)))
    Npad = _round_up(N, tm)

    Daug = _round_up(D + 1, 8)  # D features + 1 slot for ||l||^2, sublane aligned

    # VMEM accounting against the smallest generation (v7x: 64 MiB physical):
    # double-buffered uzT_aug + double-buffered lz_aug + lane-dense output.
    budget = 28 * 1024 * 1024
    uz_bytes = 2 * Daug * tm * itemsize
    out_bytes = 2 * 2 * tm * 4
    lz_budget = max(budget - uz_bytes - out_bytes, 1 * 1024 * 1024)
    tM_cap = max(16, (lz_budget // (2 * Daug * itemsize)) // 16 * 16)
    if tile_m is not None:
        tM = int(_round_up(min(tile_m, _round_up(M, 16)), 16))
    else:
        tM = int(min(2048, tM_cap, _round_up(M, 16)))
    Mpad = _round_up(M, tM)

    # ---- wrapper-side layout plumbing (one-time) -----------------------------
    lz_sq = jnp.sum(L_z * L_z, axis=-1)                              # (M,)
    lz_aug = jnp.zeros((Mpad, Daug), jnp.float32)
    lz_aug = lz_aug.at[:, D].set(_PAD_BIG)        # padded rows can never win
    lz_aug = lz_aug.at[:M, :D].set(-2.0 * L_z)
    lz_aug = lz_aug.at[:M, D].set(lz_sq)
    lz_aug = lz_aug.astype(mxu_dtype)

    uzT_aug = jnp.zeros((Daug, Npad), jnp.float32)
    uzT_aug = uzT_aug.at[:D, :N].set(U_z.T)
    uzT_aug = uzT_aug.at[D, :].set(1.0)
    uzT_aug = uzT_aug.astype(mxu_dtype)

    min_raw = pl.pallas_call(
        _min_dist_kernel,
        out_shape=jax.ShapeDtypeStruct((1, Npad), jnp.float32),
        grid_spec=pltpu.PrefetchScalarGridSpec(
            num_scalar_prefetch=0,
            grid=(Npad // tm, Mpad // tM),
            in_specs=[
                pl.BlockSpec((Daug, tm), lambda i, k: (0, i)),   # query tile (lanes)
                pl.BlockSpec((tM, Daug), lambda i, k: (k, 0)),   # labeled stream
            ],
            out_specs=pl.BlockSpec((1, tm), lambda i, k: (0, i)),  # lane-dense min
        ),
        compiler_params=pltpu.CompilerParams(
            dimension_semantics=("parallel", "arbitrary"),
            vmem_limit_bytes=48 * 1024 * 1024,
        ),
    )(uzT_aug, lz_aug)

    sq = jnp.maximum(min_raw[0, :N] + uz_sq, 0.0)
    return jnp.sqrt(sq)


def diversity_density_uncertainty(pred, U_z, L_z, lambda_=1.0, *, mxu_dtype=None):
    """Pallas implementation of DiversityDensityUncertainty.forward."""
    N = pred.shape[0]
    D = U_z.shape[1]
    M = L_z.shape[0]

    pred_f = pred.astype(jnp.float32)
    uz_f = U_z.astype(jnp.float32)

    # ---- O(N) / O(N*C) pieces stay in plain JAX (trivially fused by XLA) ----
    u = -jnp.sum(jnp.exp(pred_f) * pred_f, axis=-1)                  # entropy
    uz_sq = jnp.sum(uz_f * uz_f, axis=-1)                            # ||u||^2
    dens = -0.5 * uz_sq - 0.5 * D * _LOG_2PI                         # N(0,I) log-prob

    if M == 0:
        # Fast path: Diversity returns ones; no kernel launch, no dummy DMAs.
        div = jnp.ones((N,), jnp.float32)
    else:
        div = _min_l2_distance(uz_f, L_z.astype(jnp.float32), uz_sq,
                               mxu_dtype=mxu_dtype)

    dd = jnp.exp(dens + jnp.log(div + 1e-18))
    dd = dd - jnp.min(dd)
    dd = dd / (jnp.max(dd) + 1e-18)

    u = u - jnp.min(u)
    u = u / (jnp.max(u) + 1e-18)
    return lambda_ * u + dd


def _reference(pred, U_z, L_z, lambda_=1.0):
    """Plain-JAX reference mirroring the PyTorch semantics."""
    u = -jnp.sum(jnp.exp(pred) * pred, axis=-1)
    u = u - jnp.min(u)
    u = u / (jnp.max(u) + 1e-18)

    d = U_z.shape[-1]
    dens = -0.5 * jnp.sum(U_z * U_z, axis=-1) - 0.5 * d * math.log(2.0 * math.pi)

    if L_z.shape[0] > 0:
        diff = U_z[:, None, :] - L_z[None, :, :]
        div = jnp.min(jnp.sqrt(jnp.sum(diff * diff, axis=-1)), axis=-1)
    else:
        div = jnp.ones((U_z.shape[0],), jnp.float32)

    dd = jnp.exp(dens + jnp.log(div + 1e-18))
    dd = dd - jnp.min(dd)
    dd = dd / (jnp.max(dd) + 1e-18)
    return lambda_ * u + dd


if __name__ == "__main__":
    key = jax.random.PRNGKey(0)
    k1, k2, k3, k4, k5 = jax.random.split(key, 5)

    # ---- main end-to-end check (small shapes) --------------------------------
    N, C, M, D = 8, 10, 6, 32
    logits = jax.random.normal(k1, (N, C), dtype=jnp.float32)
    pred = jax.nn.log_softmax(logits, axis=-1)           # log-softmax classifier output
    U_z = jax.random.normal(k2, (N, D), dtype=jnp.float32)
    L_z = jax.random.normal(k3, (M, D), dtype=jnp.float32)

    out = diversity_density_uncertainty(pred, U_z, L_z, lambda_=1.0)
    out = jax.block_until_ready(out)
    ref = _reference(pred, U_z, L_z, lambda_=1.0)
    assert out.shape == (N,)
    assert jnp.allclose(out, ref, rtol=1e-4, atol=1e-4), (out, ref)

    # ---- empty-L_z fast path --------------------------------------------------
    empty = jnp.zeros((0, D), jnp.float32)
    out_e = jax.block_until_ready(diversity_density_uncertainty(pred, U_z, empty))
    ref_e = _reference(pred, U_z, empty)
    assert jnp.allclose(out_e, ref_e, rtol=1e-4, atol=1e-4), (out_e, ref_e)

    # ---- multi-tile check: 2 query tiles x 3 labeled tiles (exercise the
    #      running-min accumulator across the reduction axis) ------------------
    N2, M2, D2 = 256, 40, 32
    uz2 = jax.random.normal(k4, (N2, D2), dtype=jnp.float32)
    lz2 = jax.random.normal(k5, (M2, D2), dtype=jnp.float32)
    uz2_sq = jnp.sum(uz2 * uz2, axis=-1)
    div2 = jax.block_until_ready(_min_l2_distance(uz2, lz2, uz2_sq, tile_m=16))
    diff2 = uz2[:, None, :] - lz2[None, :, :]
    ref2 = jnp.min(jnp.sqrt(jnp.sum(diff2 * diff2, axis=-1)), axis=-1)
    assert jnp.allclose(div2, ref2, rtol=1e-4, atol=1e-4), (div2, ref2)

    print("KERNEL_OK")
</pallas_src>

<mosaic_0001>
module attributes {stable_mosaic.version = 11 : i64} {
  func.func @_min_dist_kernel(%arg0: i32, %arg1: i32, %arg2: memref<40x128xf32, #tpu.memory_space<vmem>>, %arg3: memref<16x40xf32, #tpu.memory_space<vmem>>, %arg4: memref<1x128xf32, #tpu.memory_space<vmem>>) attributes {dimension_semantics = [#tpu.dimension_semantics<parallel>, #tpu.dimension_semantics<arbitrary>], iteration_bounds = array<i64: 1, 1>, scalar_prefetch = 0 : i64, scratch_operands = 0 : i64, tpu.core_type = #tpu.core_type<tc>, window_params = [{transform_indices = @transform_0, window_bounds = array<i64: 40, 128>}, {transform_indices = @transform_1, window_bounds = array<i64: 16, 40>}, {transform_indices = @transform_2, window_bounds = array<i64: 1, 128>}]} {
    %c0_i32 = arith.constant 0 : i32
    %0 = arith.cmpi eq, %arg1, %c0_i32 : i32
    %1 = arith.extui %0 : i1 to i32
    %c0_i32_0 = arith.constant 0 : i32
    %2 = arith.cmpi ne, %1, %c0_i32_0 : i32
    scf.if %2 {
      %cst_9 = arith.constant 0x7F800000 : f32
      %11 = vector.broadcast %cst_9 : f32 to vector<1x128xf32>
      %c0_10 = arith.constant 0 : index
      %c0_11 = arith.constant 0 : index
      %12 = vector.load %arg4[%c0_10, %c0_11] : memref<1x128xf32, #tpu.memory_space<vmem>>, vector<1x128xf32>
      tpu.vector_store %arg4[%c0_10, %c0_11], %11 {strides = array<i32>} : memref<1x128xf32, #tpu.memory_space<vmem>>, vector<1x128xf32>,
    } else {
    }
    %c0 = arith.constant 0 : index
    %c0_1 = arith.constant 0 : index
    %3 = vector.load %arg3[%c0, %c0_1] : memref<16x40xf32, #tpu.memory_space<vmem>>, vector<16x40xf32>
    %c0_2 = arith.constant 0 : index
    %c0_3 = arith.constant 0 : index
    %4 = vector.load %arg2[%c0_2, %c0_3] : memref<40x128xf32, #tpu.memory_space<vmem>>, vector<40x128xf32>
    %cst = arith.constant dense<0.000000e+00> : vector<16x128xf32>
    %5 = tpu.matmul %3, %4, %cst {dimension_numbers = #tpu.dot_dimension_numbers<[1], [0], [0], [1], [0, 0, 1, 1], [], []>} : vector<16x40xf32>, vector<40x128xf32>, vector<16x128xf32> -> vector<16x128xf32>
    %c0_4 = arith.constant 0 : index
    %c0_5 = arith.constant 0 : index
    %6 = vector.load %arg4[%c0_4, %c0_5] : memref<1x128xf32, #tpu.memory_space<vmem>>, vector<1x128xf32>
    %cst_6 = arith.constant dense<0x7F800000> : vector<128xf32>
    %7 = vector.multi_reduction <minimumf>, %5, %cst_6 [0] : vector<16x128xf32> to vector<128xf32>
    %8 = vector.shape_cast %7 : vector<128xf32> to vector<1x128xf32>
    %9 = arith.minimumf %6, %8 : vector<1x128xf32>
    %c0_7 = arith.constant 0 : index
    %c0_8 = arith.constant 0 : index
    %10 = vector.load %arg4[%c0_7, %c0_8] : memref<1x128xf32, #tpu.memory_space<vmem>>, vector<1x128xf32>
    tpu.vector_store %arg4[%c0_7, %c0_8], %9 {strides = array<i32>} : memref<1x128xf32, #tpu.memory_space<vmem>>, vector<1x128xf32>,
    return
  }
  func.func @transform_0(%arg0: i32, %arg1: i32) -> (i32, i32) {
    %c0_i32 = arith.constant 0 : i32
    %c0_i32_0 = arith.constant 0 : i32
    return %c0_i32, %arg0 : i32, i32
  }
  func.func @transform_1(%arg0: i32, %arg1: i32) -> (i32, i32) {
    %c0_i32 = arith.constant 0 : i32
    %c0_i32_0 = arith.constant 0 : i32
    return %arg1, %c0_i32 : i32, i32
  }
  func.func @transform_2(%arg0: i32, %arg1: i32) -> (i32, i32) {
    %c0_i32 = arith.constant 0 : i32
    %c0_i32_0 = arith.constant 0 : i32
    return %c0_i32, %arg0 : i32, i32
  }
}

</mosaic_0001>

<bundles_post_ra>
// kernel: tpu_custom_call.1
= control target key start
LH: loop header
LB: loop body
LE: loop exit
PB: predicated region body
PF: predicated region fallthrough
CT: control target
= control target key end

     0   :  { %7 = vsyncpa [#allocation3], 0  ;;  %s327_s0 = inlined_call_operand.hbm [shape: f32[40,128], index: 0, kind: input, shape index: {}]   ;;  %s328_s1 = inlined_call_operand.hbm [shape: f32[16,40], index: 1, kind: input, shape index: {}]   ;;  %s329_s2 = inlined_call_operand.hbm [shape: f32[1,128], index: 2, kind: output, shape index: {}]  }
   0x1   :  { %8 = vsyncpa [#allocation6], 0 }
   0x2   :  { %9 = vsyncpa [#allocation4], 0  ;;  %s268_s9 = smov [#allocation2]   ;;  %s196_s13 = scalar_lea.hbm %s327_s0, 640 }
   0x3   :  { %s15_s10 = sshll.u32 %s268_s9, 4  ;;  %p197_p0 = scmp.ne.s32.totalorder %s327_s0, %s196_s13  ;;  %s16_s10 = int_to_ptr.vmem [resolvable:$true] %s15_s10 }
   0x4   :  { %p200_p1 = scmp.lt.u32.totalorder %s196_s13, %s327_s0 }
   0x6   :  { %p202_p2 = pnand %p200_p1, %p197_p0 }
   0x8   :  { %205 = shalt.err (!%p202_p2)
}
   0x9   :  { %s206_s18 = scalar_lea.vmem %s16_s10, 640  ;;  %p211_p4 = scmp.lt.s32.totalorder %s16_s10, %s16_s10 }
   0xa   :  { %p207_p3 = scmp.ne.s32.totalorder %s16_s10, %s206_s18  ;;  %p212_p5 = scmp.lt.s32.totalorder %s206_s18, %s206_s18 }
   0xc   :  { %p213_p6 = por %p212_p5, %p211_p4 }
   0xe   :  { %p214_p7 = pnand %p213_p6, %p207_p3 }
  0x10   :  { %217 = shalt.err (!%p214_p7)
}
  0x11   :  { %s269_s19 = smov 128   ;;  %s270_s20 = smov 8  }
  0x12   :  { %21 = dma.hbm_to_vmem [thread:$0]  %s327_s0, 640, %s16_s10, [#allocation3], %s269_s19, %s269_s19, %s270_s20  }
  0x13   :  { %s271_s23 = smov [#allocation5]   ;;  %s218_s27 = scalar_lea.hbm %s328_s1, 256 }
  0x14   :  { %s27_s24 = sshll.u32 %s271_s23, 4  ;;  %p219_p8 = scmp.ne.s32.totalorder %s328_s1, %s218_s27  ;;  %s28_s24 = int_to_ptr.vmem [resolvable:$true] %s27_s24 }
  0x15   :  { %p222_p9 = scmp.lt.u32.totalorder %s218_s27, %s328_s1 }
  0x17   :  { %p224_p10 = pnand %p222_p9, %p219_p8 }
  0x19   :  { %227 = shalt.err (!%p224_p10)
}
  0x1a   :  { %s228_s4 = scalar_lea.vmem %s28_s24, 256  ;;  %p233_p12 = scmp.lt.s32.totalorder %s28_s24, %s28_s24 }
  0x1b   :  { %p229_p11 = scmp.ne.s32.totalorder %s28_s24, %s228_s4  ;;  %p234_p13 = scmp.lt.s32.totalorder %s228_s4, %s228_s4 }
  0x1d   :  { %p235_p0 = por %p234_p13, %p233_p12 }
  0x1f   :  { %p236_p1 = pnand %p235_p0, %p229_p11 }
  0x21   :  { %239 = shalt.err (!%p236_p1)
}
  0x22   :  { %33 = dma.hbm_to_vmem [thread:$0]  %s328_s1, 256, %s28_s24, [#allocation6], %s269_s19, %s269_s19, %s270_s20  }
  0x23   :  { %262 = dma.done.wait [#allocation3], 640  }
  0x24   :  { %263 = vsyncadd [#allocation3], 4294966656 }
  0x25   :  { %264 = dma.done.wait [#allocation6], 256  }
  0x26   :  { %265 = vsyncadd [#allocation6], 4294967040  ;;  %vm52_vm0 = vcmask 326656   ;;  %v47_v0 = vld [vmem:[#allocation2] sm:$0xff]  ;;  %v48_v1 = vld [vmem:[#allocation2 + $0x8] sm:$0xff]  ;;  %v272_v9 = vmov inf  }
  0x27   :  { %v49_v2 = vld [vmem:[#allocation2 + $0x10] sm:$0xff]  ;;  %v182_v3 = vpack.c.bf16 %v48_v1, %v47_v0  ;;  %v50_v4 = vld [vmem:[#allocation2 + $0x18] sm:$0xff]  ;;  %v45_v5 = vld [vmem:[#allocation5] sm:$0xff]  ;;  %44 = vst [vmem:[#allocation7] sm:$0x1] %v272_v9  ;;  %s273_s1 = smov [#allocation7]  }
  0x28   :  { %v186_v6 = vpack.c.bf16 %v50_v4, %v49_v2  ;;  %179 = vmatprep.mubr.msk.f32.mxu0 %vm52_vm0, %v45_v5  ;;  %v51_v7 = vld [vmem:[#allocation2 + $0x20] sm:$0xff]  ;;  %v46_v8 = vld [vmem:[#allocation5 + $0x8] sm:$0xff]  ;;  %s150_s6 = sshll.u32 %s273_s1, 4  ;;  %s151_s6 = int_to_ptr.vmem [resolvable:$true] %s150_s6 }
  0x29   :  { %183 = vmatprep.subr.bf16.mxu0 %v182_v3  ;;  %s240_s7 = scalar_lea.vmem %s151_s6, 16  ;;  %s244_s8 = scalar_lea.vmem %s151_s6, 32 }
  0x2a   :  { %185 = vmatpush3.bf16.msra.mxu0 %v182_v3  ;;  %p241_p2 = scmp.ne.s32.totalorder %s151_s6, %s240_s7  ;;  %p245_p3 = scmp.lt.s32.totalorder %s151_s6, %s151_s6 }
  0x2b   :  { %187 = vmatprep.subr.bf16.mxu0 %v186_v6  ;;  %p246_p4 = scmp.lt.s32.totalorder %s244_s8, %s240_s7 }
  0x2d   :  { %p247_p5 = por %p246_p4, %p245_p3 }
  0x2e   :  { %189 = vmatpush3.bf16.msra.mxu0 %v186_v6  ;;  %v134_v18 = vld [vmem:[#allocation7] sm:$0x1] }
  0x2f   :  { %177 = vmatprep.subr.mxu0 %v51_v7  ;;  %p248_p6 = pnand %p247_p5, %p241_p2 }
  0x32   :  { %178 = vmatpush3.msra.mxu0 %v51_v7 }
  0x33   :  { %180 = vmatmul.mubr.msk.f32.vlgmr.msra.gmra.mrb[0].mxu0 %vm52_vm0, %v46_v8 }
 0x106   :  { %v181_v10 = vpop.f32.mrb[0].mxu0 }
 0x107   :  { %v125_v11 = vpop.f32.mrb[1].mxu0 }
 0x108   :  { %v135_v12 = vmin.f32 %v125_v11, %v181_v10 }
 0x10a   :  { %v136_v13 = vrot.slane %v135_v12, 4 }
 0x10c   :  { %v137_v14 = vmin.f32 %v135_v12, %v136_v13 }
 0x10e   :  { %v138_v15 = vrot.slane %v137_v14, 2 }
 0x110   :  { %v139_v16 = vmin.f32 %v137_v14, %v138_v15 }
 0x112   :  { %v140_v17 = vrot.slane %v139_v16, 1 }
 0x114   :  { %v141_v19 = vmin.f32 %v139_v16, %v140_v17 }
 0x116   :  { %v142_v20 = vmin.f32 %v134_v18, %v141_v19 }
 0x118   :  { %143 = vst [vmem:[#allocation7] sm:$0x1] %v142_v20 }
 0x119   :  { %251 = shalt.err (!%p248_p6)
}
 0x11a   :  { %s252_s11 = scalar_lea.hbm %s329_s2, 16 }
 0x11b   :  { %p253_p7 = scmp.ne.s32.totalorder %s329_s2, %s252_s11  ;;  %p256_p8 = scmp.lt.u32.totalorder %s252_s11, %s329_s2 }
 0x11d   :  { %p258_p9 = pnand %p256_p8, %p253_p7 }
 0x11f   :  { %261 = shalt.err (!%p258_p9)
}
 0x120   :  { %153 = dma.vmem_to_hbm [thread:$0]  %s151_s6, 16, %s329_s2, [#allocation4]  }
 0x121   :  { %266 = dma.done.wait [#allocation4], 16  }
 0x122   :  { %267 = vsyncadd [#allocation4], 4294967280 }
 0x123   :  { %157 = vsyncpa [#allocation3], 1 }
 0x124   :  { %158 = vsyncpa [#allocation6], 1 }
 0x125   :  { %159 = vsyncpa [#allocation4], 1 }

</bundles_post_ra>
